<compile_context>
chip_gen: v7x
topology: tpu7x:2x2x1
jax: 0.10.0
libtpu: 0.0.40
codegen_flags: <defaults>
</compile_context>

<pallas_src>
import functools

import jax
import jax.numpy as jnp
from jax.experimental import pallas as pl
from jax.experimental.pallas import tpu as pltpu


def _round_up(v, m):
    return ((v + m - 1) // m) * m


def _encoder_kernel(x_ref, w1_ref, b1_ref, wh_ref, bh_ref, out_ref):
    # Layer 1: Linear(1, 64) + ReLU with batch on lanes.
    #   w1_ref: [64, 1]  (hidden units on sublanes)
    #   x_ref : [1, TM]  (batch tile on lanes)
    # VPU broadcast outer product (a K=1 MXU matmul would waste the array).
    h = jnp.maximum(w1_ref[...] * x_ref[...] + b1_ref[...], 0.0)      # [64, TM]

    # Fused mean|log_var head: [2L, 64] @ [64, TM] -> [2L, TM] on the MXU.
    # TM is a multiple of 128, so this store is lane-dense and unmasked.
    out_ref[...] = (
        jnp.dot(wh_ref[...], h, preferred_element_type=jnp.float32)
        + bh_ref[...]
    ).astype(out_ref.dtype)


def prepare_encoder_params(params):
    """One-time prep: fuse the two heads and transpose to the batch-on-lanes
    layout the kernel expects.  Re-run only when the parameters change."""
    w1, b1, wm, bm, wv, bv = params
    w1_t = w1.T                                     # [64, 1]
    b1_t = b1.T                                     # [64, 1]
    wh_t = jnp.concatenate([wm, wv], axis=1).T      # [2L, 64]
    bh_t = jnp.concatenate([bm, bv], axis=1).T      # [2L, 1]
    return (w1_t, b1_t, wh_t, bh_t)


@functools.partial(jax.jit, static_argnames=("block_m",))
def encoder_forward(x, prepared_params, *, block_m=16384):
    """x: [B, 1] float32. prepared_params = prepare_encoder_params(params).

    Returns (latent_mean, latent_log_var), each [B, L]."""
    w1_t, b1_t, wh_t, bh_t = prepared_params
    B = x.shape[0]
    two_l = wh_t.shape[0]
    L = two_l // 2

    # Batch tile along the lane axis:
    #  * multiple of 128 (unmasked lane-dense loads/stores),
    #  * >= 2 grid steps whenever possible (v7x megacore sharding),
    #  * capped at block_m to keep per-step VMEM (~(64 + 32)*4*TM bytes plus
    #    double buffers) comfortably under every generation's VMEM.
    b_lanes = _round_up(B, 128)
    tm = min(block_m, max(128, _round_up(pl.cdiv(b_lanes, 2), 128)))
    b_pad = _round_up(B, tm)
    grid = (b_pad // tm,)

    # [B, 1] -> [1, B_pad]; padded columns compute relu(b1) garbage that is
    # sliced off below.
    x_t = x.reshape(1, B)
    if b_pad != B:
        x_t = jnp.pad(x_t, ((0, 0), (0, b_pad - B)))

    out = pl.pallas_call(
        _encoder_kernel,
        out_shape=jax.ShapeDtypeStruct((two_l, b_pad), jnp.float32),
        grid=grid,
        in_specs=[
            pl.BlockSpec((1, tm), lambda i: (0, i)),       # x batch tile (lanes)
            pl.BlockSpec((64, 1), lambda i: (0, 0)),       # w1^T (VMEM-resident)
            pl.BlockSpec((64, 1), lambda i: (0, 0)),       # b1^T (VMEM-resident)
            pl.BlockSpec((two_l, 64), lambda i: (0, 0)),   # fused head W^T (resident)
            pl.BlockSpec((two_l, 1), lambda i: (0, 0)),    # fused head b^T (resident)
        ],
        out_specs=pl.BlockSpec((two_l, tm), lambda i: (0, i)),
        compiler_params=pltpu.CompilerParams(
            dimension_semantics=("parallel",),
            vmem_limit_bytes=32 * 1024 * 1024,
        ),
    )(x_t, w1_t, b1_t, wh_t, bh_t)

    out = out[:, :B]            # [2L, B]
    latent_mean = out[:L, :].T  # [B, L]
    latent_log_var = out[L:, :].T
    return latent_mean, latent_log_var


def init_params(key, latent_dim=1):
    """Deterministic synthetic init matching the nn.Module parameter shapes
    (stored in the natural [in, out] layout used by the reference)."""
    k1, k2, k3, k4, k5, k6 = jax.random.split(key, 6)
    # fc: Linear(1, 64)         -> W [1, 64],  b [1, 64]
    # fc_mean: Linear(64, L)    -> W [64, L],  b [1, L]
    # fc_log_var: Linear(64, L) -> W [64, L],  b [1, L]
    w1 = jax.random.uniform(k1, (1, 64), jnp.float32, -1.0, 1.0)
    b1 = jax.random.uniform(k2, (1, 64), jnp.float32, -1.0, 1.0)
    wm = jax.random.uniform(k3, (64, latent_dim), jnp.float32, -0.125, 0.125)
    bm = jax.random.uniform(k4, (1, latent_dim), jnp.float32, -0.125, 0.125)
    wv = jax.random.uniform(k5, (64, latent_dim), jnp.float32, -0.125, 0.125)
    bv = jax.random.uniform(k6, (1, latent_dim), jnp.float32, -0.125, 0.125)
    return (w1, b1, wm, bm, wv, bv)


def encoder_reference(x, params):
    """Pure-JAX reference for correctness check."""
    w1, b1, wm, bm, wv, bv = params
    h = jnp.maximum(x @ w1 + b1, 0.0)
    return h @ wm + bm, h @ wv + bv


if __name__ == "__main__":
    latent_dim = 1
    batch = 8

    key = jax.random.PRNGKey(0)
    kx, kp = jax.random.split(key)
    x = jax.random.normal(kx, (batch, 1), jnp.float32)
    params = init_params(kp, latent_dim)
    prepared = prepare_encoder_params(params)   # hoisted fuse/transpose

    mean, log_var = encoder_forward(x, prepared)
    jax.block_until_ready((mean, log_var))

    ref_mean, ref_log_var = encoder_reference(x, params)
    assert mean.shape == (batch, latent_dim)
    assert log_var.shape == (batch, latent_dim)
    assert jnp.allclose(mean, ref_mean, atol=1e-5, rtol=1e-5)
    assert jnp.allclose(log_var, ref_log_var, atol=1e-5, rtol=1e-5)

    print("KERNEL_OK")
</pallas_src>

<mosaic_0001>
module attributes {stable_mosaic.version = 11 : i64} {
  func.func @_encoder_kernel(%arg0: i32, %arg1: memref<1x128xf32, #tpu.memory_space<vmem>>, %arg2: memref<64x1xf32, #tpu.memory_space<vmem>>, %arg3: memref<64x1xf32, #tpu.memory_space<vmem>>, %arg4: memref<2x64xf32, #tpu.memory_space<vmem>>, %arg5: memref<2x1xf32, #tpu.memory_space<vmem>>, %arg6: memref<2x128xf32, #tpu.memory_space<vmem>>) attributes {dimension_semantics = [#tpu.dimension_semantics<parallel>], iteration_bounds = array<i64: 1>, scalar_prefetch = 0 : i64, scratch_operands = 0 : i64, tpu.core_type = #tpu.core_type<tc>, window_params = [{transform_indices = @transform_0, window_bounds = array<i64: 1, 128>}, {pipeline_mode = #tpu.pipeline_mode<synchronous>, transform_indices = @transform_1, window_bounds = array<i64: 64, 1>}, {pipeline_mode = #tpu.pipeline_mode<synchronous>, transform_indices = @transform_2, window_bounds = array<i64: 64, 1>}, {pipeline_mode = #tpu.pipeline_mode<synchronous>, transform_indices = @transform_3, window_bounds = array<i64: 2, 64>}, {pipeline_mode = #tpu.pipeline_mode<synchronous>, transform_indices = @transform_4, window_bounds = array<i64: 2, 1>}, {transform_indices = @transform_5, window_bounds = array<i64: 2, 128>}]} {
    %c0 = arith.constant 0 : index
    %c0_0 = arith.constant 0 : index
    %0 = vector.load %arg2[%c0, %c0_0] : memref<64x1xf32, #tpu.memory_space<vmem>>, vector<64x1xf32>
    %c0_1 = arith.constant 0 : index
    %c0_2 = arith.constant 0 : index
    %1 = vector.load %arg1[%c0_1, %c0_2] : memref<1x128xf32, #tpu.memory_space<vmem>>, vector<1x128xf32>
    %2 = vector.broadcast %0 : vector<64x1xf32> to vector<64x128xf32>
    %3 = vector.broadcast %1 : vector<1x128xf32> to vector<64x128xf32>
    %4 = arith.mulf %2, %3 : vector<64x128xf32>
    %c0_3 = arith.constant 0 : index
    %c0_4 = arith.constant 0 : index
    %5 = vector.load %arg3[%c0_3, %c0_4] : memref<64x1xf32, #tpu.memory_space<vmem>>, vector<64x1xf32>
    %6 = vector.broadcast %5 : vector<64x1xf32> to vector<64x128xf32>
    %7 = arith.addf %4, %6 : vector<64x128xf32>
    %cst = arith.constant 0.000000e+00 : f32
    %8 = vector.broadcast %cst : f32 to vector<64x128xf32>
    %9 = arith.maximumf %7, %8 : vector<64x128xf32>
    %c0_5 = arith.constant 0 : index
    %c0_6 = arith.constant 0 : index
    %10 = vector.load %arg4[%c0_5, %c0_6] : memref<2x64xf32, #tpu.memory_space<vmem>>, vector<2x64xf32>
    %cst_7 = arith.constant dense<0.000000e+00> : vector<2x128xf32>
    %11 = tpu.matmul %10, %9, %cst_7 {dimension_numbers = #tpu.dot_dimension_numbers<[1], [0], [0], [1], [0, 0, 1, 1], [], []>} : vector<2x64xf32>, vector<64x128xf32>, vector<2x128xf32> -> vector<2x128xf32>
    %c0_8 = arith.constant 0 : index
    %c0_9 = arith.constant 0 : index
    %12 = vector.load %arg5[%c0_8, %c0_9] : memref<2x1xf32, #tpu.memory_space<vmem>>, vector<2x1xf32>
    %13 = vector.broadcast %12 : vector<2x1xf32> to vector<2x128xf32>
    %14 = arith.addf %11, %13 : vector<2x128xf32>
    %c0_10 = arith.constant 0 : index
    %c0_11 = arith.constant 0 : index
    %15 = vector.load %arg6[%c0_10, %c0_11] : memref<2x128xf32, #tpu.memory_space<vmem>>, vector<2x128xf32>
    tpu.vector_store %arg6[%c0_10, %c0_11], %14 {strides = array<i32>} : memref<2x128xf32, #tpu.memory_space<vmem>>, vector<2x128xf32>,
    return
  }
  func.func @transform_0(%arg0: i32) -> (i32, i32) {
    %c0_i32 = arith.constant 0 : i32
    %c0_i32_0 = arith.constant 0 : i32
    return %c0_i32, %arg0 : i32, i32
  }
  func.func @transform_1(%arg0: i32) -> (i32, i32) {
    %c0_i32 = arith.constant 0 : i32
    %c0_i32_0 = arith.constant 0 : i32
    %c0_i32_1 = arith.constant 0 : i32
    return %c0_i32, %c0_i32_0 : i32, i32
  }
  func.func @transform_2(%arg0: i32) -> (i32, i32) {
    %c0_i32 = arith.constant 0 : i32
    %c0_i32_0 = arith.constant 0 : i32
    %c0_i32_1 = arith.constant 0 : i32
    return %c0_i32, %c0_i32_0 : i32, i32
  }
  func.func @transform_3(%arg0: i32) -> (i32, i32) {
    %c0_i32 = arith.constant 0 : i32
    %c0_i32_0 = arith.constant 0 : i32
    %c0_i32_1 = arith.constant 0 : i32
    return %c0_i32, %c0_i32_0 : i32, i32
  }
  func.func @transform_4(%arg0: i32) -> (i32, i32) {
    %c0_i32 = arith.constant 0 : i32
    %c0_i32_0 = arith.constant 0 : i32
    %c0_i32_1 = arith.constant 0 : i32
    return %c0_i32, %c0_i32_0 : i32, i32
  }
  func.func @transform_5(%arg0: i32) -> (i32, i32) {
    %c0_i32 = arith.constant 0 : i32
    %c0_i32_0 = arith.constant 0 : i32
    return %c0_i32, %arg0 : i32, i32
  }
}

</mosaic_0001>

<bundles_post_ra>
// kernel: encoder_forward.1
= control target key start
LH: loop header
LB: loop body
LE: loop exit
PB: predicated region body
PF: predicated region fallthrough
CT: control target
= control target key end

     0   :  { %v281_v0 = vmov 0   ;;  %v282_v9 = vmov 0.0|0.0   ;;  %vm283_vm0 = vmmov 0   ;;  %v284_v19 = vmov 0.0   ;;  %s379_s2 = inlined_call_operand.vmem [shape: f32[64,1], index: 2, kind: input, shape index: {}]   ;;  %s380_s1 = inlined_call_operand.vmem [shape: f32[64,1], index: 1, kind: input, shape index: {}]   ;;  %s381_s4 = inlined_call_operand.vmem [shape: f32[2,1], index: 4, kind: input, shape index: {}]   ;;  %s382_s0 = inlined_call_operand.vmem [shape: f32[1,128], index: 0, kind: input, shape index: {}]   ;;  %s383_s3 = inlined_call_operand.vmem [shape: f32[2,64], index: 3, kind: input, shape index: {}]   ;;  %s384_s5 = inlined_call_operand.vmem [shape: f32[2,128], index: 5, kind: output, shape index: {}]  }
   0x1   :  { %280 = vset.pattern.permute.xlu1 %v281_v0  ;;  %279 = vset.pattern.permute.xlu0 %v281_v0  ;;  %v83_v1 = vld [vmem:[%s379_s2] sm:$0xff]  ;;  %v84_v3 = vld [vmem:[%s379_s2 + $0x8] sm:$0xff]  ;;  %v23_v5 = vld [vmem:[%s380_s1 + $0x18] sm:$0xff]  ;;  %vm154_vm1 = vcmask 523264  }
   0x2   :  { %v20_v2 = vld [vmem:[%s380_s1] sm:$0xff]  ;;  %93 = vperm.xlu1 %280, %v83_v1   ;;  %v21_v4 = vld [vmem:[%s380_s1 + $0x8] sm:$0xff]  ;;  %v22_v6 = vld [vmem:[%s380_s1 + $0x10] sm:$0xff]  ;;  %263 = vmatprep.subr.bf16.mxu0 %v282_v9 }
   0x3   :  { %31 = vperm.xlu0 %279, %v20_v2   ;;  %v86_v7 = vld [vmem:[%s379_s2 + $0x18] sm:$0xff]  ;;  %v85_v8 = vld [vmem:[%s379_s2 + $0x10] sm:$0xff]  ;;  %v25_v10 = vld [vmem:[%s380_s1 + $0x28] sm:$0xff]  ;;  %260 = vmatprep.mubr.msk.f32.mxu0 %vm283_vm0, %v284_v19 }
   0x4   :  { %v24_v11 = vld [vmem:[%s380_s1 + $0x20] sm:$0xff]  ;;  %v88_v12 = vld [vmem:[%s379_s2 + $0x28] sm:$0xff]  ;;  %v27_v14 = vld [vmem:[%s380_s1 + $0x38] sm:$0xff] }
   0x5   :  { %v87_v13 = vld [vmem:[%s379_s2 + $0x20] sm:$0xff]  ;;  %v26_v15 = vld [vmem:[%s380_s1 + $0x30] sm:$0xff]  ;;  %v90_v16 = vld [vmem:[%s379_s2 + $0x38] sm:$0xff] }
   0x6   :  { %98 = vperm.xlu1 %280, %v84_v3   ;;  %v89_v17 = vld [vmem:[%s379_s2 + $0x30] sm:$0xff]  ;;  %v148_v18 = vld [vmem:[%s381_s4] sm:$0x3] }
   0x7   :  { %36 = vperm.xlu0 %279, %v21_v4   ;;  %v233_v20 = vld [vmem:[%s382_s0] ss:$0 sm:$0xff] }
   0x8   :  { %v147_v1 = vld [vmem:[%s383_s3] sm:$0x3] }
   0xa   :  { %46 = vperm.xlu1 %280, %v23_v5  }
   0xb   :  { %41 = vperm.xlu0 %279, %v22_v6  }
   0xe   :  { %108 = vperm.xlu1 %280, %v86_v7  }
   0xf   :  { %103 = vperm.xlu0 %279, %v85_v8  }
  0x12   :  { %56 = vperm.xlu1 %280, %v25_v10  }
  0x13   :  { %51 = vperm.xlu0 %279, %v24_v11  }
  0x16   :  { %118 = vperm.xlu1 %280, %v88_v12  }
  0x17   :  { %113 = vperm.xlu0 %279, %v87_v13  }
  0x1a   :  { %66 = vperm.xlu1 %280, %v27_v14  }
  0x1b   :  { %61 = vperm.xlu0 %279, %v26_v15  }
  0x1e   :  { %128 = vperm.xlu1 %280, %v90_v16  }
  0x1f   :  { %123 = vperm.xlu0 %279, %v89_v17  }
  0x23   :  { %151 = vperm.xlu0 %279, %v148_v18  }
  0x81   :  { %v94_v21 = vpop.permute.xlu1 %93 }
  0x82   :  { %v32_v22 = vpop.permute.xlu0 %31 }
  0x83   :  { %v75_v23 = vmul.f32 %v233_v20, %v32_v22 }
  0x85   :  { %v99_v24 = vpop.permute.xlu1 %98  ;;  %v131_v26 = vadd.f32 %v94_v21, %v75_v23 }
  0x86   :  { %v37_v25 = vpop.permute.xlu0 %36 }
  0x87   :  { %v76_v27 = vmul.f32 %v233_v20, %v37_v25  ;;  %v139_v31 = vmax.f32 %v131_v26, 0.0 }
  0x89   :  { %v132_v28 = vadd.f32 %v99_v24, %v76_v27  ;;  %v47_v29 = vpop.permute.xlu1 %46 }
  0x8a   :  { %v42_v30 = vpop.permute.xlu0 %41  ;;  %v78_v33 = vmul.f32 %v233_v20, %v47_v29 }
  0x8b   :  { %v140_v32 = vmax.f32 %v132_v28, 0.0  ;;  %v77_v34 = vmul.f32 %v233_v20, %v42_v30 }
  0x8d   :  { %v264_v35 = vpack.c.bf16 %v140_v32, %v139_v31  ;;  %v109_v36 = vpop.permute.xlu1 %108 }
  0x8e   :  { %v104_v37 = vpop.permute.xlu0 %103  ;;  %v134_v38 = vadd.f32 %v109_v36, %v78_v33 }
  0x8f   :  { %v133_v39 = vadd.f32 %v104_v37, %v77_v34  ;;  %265 = vmatpush3.bf16.msra.mxu0 %v264_v35 }
  0x90   :  { %266 = vmatprep.subr.bf16.mxu0 %v282_v9  ;;  %v142_v40 = vmax.f32 %v134_v38, 0.0 }
  0x91   :  { %v141_v41 = vmax.f32 %v133_v39, 0.0  ;;  %v57_v42 = vpop.permute.xlu1 %56 }
  0x92   :  { %v52_v43 = vpop.permute.xlu0 %51  ;;  %v80_v45 = vmul.f32 %v233_v20, %v57_v42 }
  0x93   :  { %v267_v44 = vpack.c.bf16 %v142_v40, %v141_v41  ;;  %v79_v46 = vmul.f32 %v233_v20, %v52_v43 }
  0x95   :  { %268 = vmatpush3.bf16.msra.mxu0 %v267_v44  ;;  %v119_v47 = vpop.permute.xlu1 %118 }
  0x96   :  { %v114_v48 = vpop.permute.xlu0 %113  ;;  %269 = vmatprep.subr.bf16.mxu0 %v282_v9  ;;  %v136_v49 = vadd.f32 %v119_v47, %v80_v45 }
  0x97   :  { %v135_v50 = vadd.f32 %v114_v48, %v79_v46 }
  0x98   :  { %v144_v51 = vmax.f32 %v136_v49, 0.0 }
  0x99   :  { %v143_v52 = vmax.f32 %v135_v50, 0.0  ;;  %v67_v53 = vpop.permute.xlu1 %66 }
  0x9a   :  { %v62_v54 = vpop.permute.xlu0 %61  ;;  %v82_v56 = vmul.f32 %v233_v20, %v67_v53 }
  0x9b   :  { %v270_v55 = vpack.c.bf16 %v144_v51, %v143_v52  ;;  %v81_v57 = vmul.f32 %v233_v20, %v62_v54 }
  0x9d   :  { %271 = vmatpush3.bf16.msra.mxu0 %v270_v55  ;;  %v129_v58 = vpop.permute.xlu1 %128 }
  0x9e   :  { %v124_v59 = vpop.permute.xlu0 %123  ;;  %272 = vmatprep.subr.bf16.mxu0 %v282_v9  ;;  %v138_v60 = vadd.f32 %v129_v58, %v82_v56 }
  0x9f   :  { %v137_v61 = vadd.f32 %v124_v59, %v81_v57 }
  0xa0   :  { %v146_v62 = vmax.f32 %v138_v60, 0.0 }
  0xa1   :  { %v145_v63 = vmax.f32 %v137_v61, 0.0 }
  0xa2   :  { %v152_v2 = vpop.permute.xlu0 %151 }
  0xa3   :  { %v273_v0 = vpack.c.bf16 %v146_v62, %v145_v63 }
  0xa5   :  { %274 = vmatpush3.bf16.msra.mxu0 %v273_v0 }
  0xa8   :  { %261 = vmatmul.mubr.msk.f32.vlgmr.msra.gmra.mrb[0].mxu0 %vm154_vm1, %v147_v1 }
 0x17b   :  { %v224_v3 = vpop.f32.mrb[0].mxu0 }
 0x17c   :  { %v225_v4 = vadd.f32 %v224_v3, %v152_v2  ;;  %v262_v5 = vpop.f32.mrb[1].mxu0 }
 0x17e   :  { %228 = vst [vmem:[%s384_s5] sm:$0x3] %v225_v4 }

</bundles_post_ra>
